<compile_context>
chip_gen: v5e
topology: v5e:2x2
jax: 0.10.0
libtpu: 0.0.40
codegen_flags: <defaults>
</compile_context>

<pallas_src>
import functools

import jax
import jax.numpy as jnp
from jax.experimental import pallas as pl
from jax.experimental.pallas import tpu as pltpu


def _lna_kernel(x_ref, w_ref, t_ref, o_ref, *, apply_relu):
    # x_ref: (C_in, lT) slab of one batch element (B dim squeezed by the BlockSpec).
    # w_ref: (C_out, C_in) resident weights with the BN scale pre-folded in.
    # t_ref: (C_out, 1) resident folded BatchNorm bias (f32).
    # o_ref: (C_out, lT) output slab (lane-dense, unmasked stores when lT % 128 == 0).
    y = jnp.dot(w_ref[...], x_ref[...], preferred_element_type=jnp.float32)  # MXU, f32 acc
    y = y + t_ref[...]                                                       # per-channel BN bias
    if apply_relu:
        y = jnp.maximum(y, 0.0)
    o_ref[...] = y.astype(o_ref.dtype)


def _vmem_capacity_bytes():
    try:
        return int(pltpu.get_tpu_info().vmem_capacity_bytes)
    except Exception:
        return 64 * 2 ** 20  # conservative fallback (v7x per-TensorCore VMEM)


def _pick_l_tile(L, C_in, C_out, itemsize, vmem_cap, max_l_tile):
    # VMEM bytes needed per lane of tile width: double-buffered x + out streaming blocks
    # plus the f32 matmul/epilogue intermediate.
    per_lane = 2 * (C_in + C_out) * itemsize + C_out * 4
    resident = C_out * C_in * itemsize + C_out * 4
    budget = int(0.40 * vmem_cap) - resident - (2 << 20)
    cap = max(128, (budget // per_lane) // 128 * 128)
    cap = min(cap, max_l_tile)
    if L <= cap:
        return L  # full-extent block: always legal, single tile, no masked stores
    # Prefer the largest multiple-of-128 tile <= cap that divides L (all stores unmasked).
    for t in range(cap, 127, -128):
        if L % t == 0:
            return t
    return cap  # ragged last block handled by Pallas with masked stores


def linear_norm_activation(x, weight, gamma, beta, running_mean, running_var,
                           *, eps=1e-5, activation="relu", max_l_tile=8192):
    """Non-depthwise LinearNormActivation forward.

    x: (B, C_in, L); weight: (C_out, C_in) (PyTorch nn.Linear layout, bias=False);
    gamma/beta/running_mean/running_var: (C_out,) BatchNorm1d(out_size) parameters.
    Returns (B, C_out, L).
    """
    B, C_in, L = x.shape
    C_out = weight.shape[0]

    # Fold eval-mode BatchNorm1d into the linear weights + a per-channel bias, all in f32:
    #   (W @ x) * s + t  ==  (W * s[:, None]) @ x + t
    inv_std = jax.lax.rsqrt(running_var.astype(jnp.float32) + jnp.float32(eps))
    s = gamma.astype(jnp.float32) * inv_std
    t = (beta.astype(jnp.float32) - running_mean.astype(jnp.float32) * s).reshape(C_out, 1)
    w = (weight.astype(jnp.float32) * s[:, None]).astype(x.dtype)  # single cast after f32 fold

    itemsize = jnp.dtype(x.dtype).itemsize
    vmem_cap = _vmem_capacity_bytes()
    lT = _pick_l_tile(L, C_in, C_out, itemsize, vmem_cap, max_l_tile)
    grid = (B, pl.cdiv(L, lT))

    # Scoped-VMEM limit: ~1.5x of what the buffers actually need + headroom, clamped under the
    # physical capacity of the current generation (never the old hard 48 MiB cap).
    need = (2 * (C_in + C_out) * lT * itemsize      # double-buffered streaming x + out blocks
            + C_out * C_in * itemsize + C_out * 4   # resident weights + bias
            + C_out * lT * 4)                       # f32 matmul/epilogue intermediate
    vmem_limit = int(min(max(int(1.5 * need) + (8 << 20), 16 << 20), int(0.9 * vmem_cap)))

    kernel = functools.partial(_lna_kernel, apply_relu=(activation == "relu"))

    def _call(single_buffer_residents):
        resident_kwargs = {}
        if single_buffer_residents and hasattr(pl, "Buffered"):
            # Constant index_maps -> never re-fetched; single-buffering halves their footprint.
            resident_kwargs = dict(pipeline_mode=pl.Buffered(1))
        return pl.pallas_call(
            kernel,
            out_shape=jax.ShapeDtypeStruct((B, C_out, L), x.dtype),
            grid_spec=pltpu.PrefetchScalarGridSpec(
                num_scalar_prefetch=0,
                grid=grid,
                in_specs=[
                    # x: streamed per (batch, L-tile), lane-dense (C_in, lT) slab.
                    pl.BlockSpec((None, C_in, lT), lambda b, l: (b, 0, l)),
                    # Folded weights: resident.
                    pl.BlockSpec((C_out, C_in), lambda b, l: (0, 0), **resident_kwargs),
                    # Folded BN bias: resident.
                    pl.BlockSpec((C_out, 1), lambda b, l: (0, 0), **resident_kwargs),
                ],
                out_specs=pl.BlockSpec((None, C_out, lT), lambda b, l: (b, 0, l)),
            ),
            compiler_params=pltpu.CompilerParams(
                dimension_semantics=("parallel", "parallel"),  # no reduction axis; megacore OK
                vmem_limit_bytes=vmem_limit,
            ),
        )(x, w, t)

    try:
        return _call(True)
    except Exception:
        # Fallback if this jax build rejects buffer_count=1 for the resident operands.
        return _call(False)


def _reference(x, weight, gamma, beta, running_mean, running_var, eps=1e-5):
    # y[b, o, l] = sum_c W[o, c] * x[b, c, l]  (== linear(x.T).T with bias=False)
    y = jnp.einsum("oc,bcl->bol", weight.astype(jnp.float32), x.astype(jnp.float32))
    y = (y - running_mean[None, :, None]) / jnp.sqrt(running_var[None, :, None] + eps)
    y = y * gamma[None, :, None] + beta[None, :, None]
    return jnp.maximum(y, 0.0).astype(x.dtype)


if __name__ == "__main__":
    # batch=2, in_size=8, out_size=16, spatial length L=256 (lane-dense, fits one tile).
    B, C_in, C_out, L = 2, 8, 16, 256

    key = jax.random.PRNGKey(0)
    kx, kw, kg, kb, km, kv = jax.random.split(key, 6)

    x = jax.random.normal(kx, (B, C_in, L), dtype=jnp.float32)
    weight = jax.random.normal(kw, (C_out, C_in), dtype=jnp.float32) * 0.2   # nn.Linear (out, in)
    gamma = 1.0 + 0.1 * jax.random.normal(kg, (C_out,), dtype=jnp.float32)
    beta = 0.1 * jax.random.normal(kb, (C_out,), dtype=jnp.float32)
    running_mean = 0.1 * jax.random.normal(km, (C_out,), dtype=jnp.float32)
    running_var = jax.random.uniform(kv, (C_out,), dtype=jnp.float32, minval=0.5, maxval=1.5)

    out = linear_norm_activation(x, weight, gamma, beta, running_mean, running_var,
                                 activation="relu")
    out = jax.block_until_ready(out)

    ref = _reference(x, weight, gamma, beta, running_mean, running_var)
    assert out.shape == (B, C_out, L)
    assert jnp.allclose(out, ref, atol=1e-4, rtol=1e-4), "mismatch vs reference"

    print("KERNEL_OK")
</pallas_src>

<mosaic_0001>
module attributes {stable_mosaic.version = 11 : i64} {
  func.func @_lna_kernel(%arg0: i32, %arg1: i32, %arg2: memref<1x8x256xf32, #tpu.memory_space<vmem>>, %arg3: memref<16x8xf32, #tpu.memory_space<vmem>>, %arg4: memref<16x1xf32, #tpu.memory_space<vmem>>, %arg5: memref<1x16x256xf32, #tpu.memory_space<vmem>>) attributes {dimension_semantics = [#tpu.dimension_semantics<parallel>, #tpu.dimension_semantics<parallel>], iteration_bounds = array<i64: 2, 1>, scalar_prefetch = 0 : i64, scratch_operands = 0 : i64, tpu.core_type = #tpu.core_type<tc>, window_params = [{transform_indices = @transform_0, window_bounds = array<i64: 1, 8, 256>}, {pipeline_mode = #tpu.pipeline_mode<synchronous>, transform_indices = @transform_1, window_bounds = array<i64: 16, 8>}, {pipeline_mode = #tpu.pipeline_mode<synchronous>, transform_indices = @transform_2, window_bounds = array<i64: 16, 1>}, {transform_indices = @transform_3, window_bounds = array<i64: 1, 16, 256>}]} {
    %c0 = arith.constant 0 : index
    %c0_0 = arith.constant 0 : index
    %0 = vector.load %arg3[%c0, %c0_0] : memref<16x8xf32, #tpu.memory_space<vmem>>, vector<16x8xf32>
    %c0_1 = arith.constant 0 : index
    %c0_2 = arith.constant 0 : index
    %c0_3 = arith.constant 0 : index
    %1 = vector.load %arg2[%c0_1, %c0_2, %c0_3] : memref<1x8x256xf32, #tpu.memory_space<vmem>>, vector<1x8x256xf32>
    %2 = vector.shape_cast %1 : vector<1x8x256xf32> to vector<8x256xf32>
    %cst = arith.constant dense<0.000000e+00> : vector<16x256xf32>
    %3 = tpu.matmul %0, %2, %cst {dimension_numbers = #tpu.dot_dimension_numbers<[1], [0], [0], [1], [0, 0, 1, 1], [], []>} : vector<16x8xf32>, vector<8x256xf32>, vector<16x256xf32> -> vector<16x256xf32>
    %c0_4 = arith.constant 0 : index
    %c0_5 = arith.constant 0 : index
    %4 = vector.load %arg4[%c0_4, %c0_5] : memref<16x1xf32, #tpu.memory_space<vmem>>, vector<16x1xf32>
    %5 = vector.broadcast %4 : vector<16x1xf32> to vector<16x256xf32>
    %6 = arith.addf %3, %5 : vector<16x256xf32>
    %cst_6 = arith.constant 0.000000e+00 : f32
    %7 = vector.broadcast %cst_6 : f32 to vector<16x256xf32>
    %8 = arith.maximumf %6, %7 : vector<16x256xf32>
    %c0_7 = arith.constant 0 : index
    %c0_8 = arith.constant 0 : index
    %c0_9 = arith.constant 0 : index
    %9 = vector.load %arg5[%c0_7, %c0_8, %c0_9] : memref<1x16x256xf32, #tpu.memory_space<vmem>>, vector<1x16x256xf32>
    %10 = vector.shape_cast %9 : vector<1x16x256xf32> to vector<16x256xf32>
    %11 = vector.shape_cast %8 : vector<16x256xf32> to vector<1x16x256xf32>
    tpu.vector_store %arg5[%c0_7, %c0_8, %c0_9], %11 {strides = array<i32>} : memref<1x16x256xf32, #tpu.memory_space<vmem>>, vector<1x16x256xf32>,
    return
  }
  func.func @transform_0(%arg0: i32, %arg1: i32) -> (i32, i32, i32) {
    %c0_i32 = arith.constant 0 : i32
    %c0_i32_0 = arith.constant 0 : i32
    return %arg0, %c0_i32, %arg1 : i32, i32, i32
  }
  func.func @transform_1(%arg0: i32, %arg1: i32) -> (i32, i32) {
    %c0_i32 = arith.constant 0 : i32
    %c0_i32_0 = arith.constant 0 : i32
    %c0_i32_1 = arith.constant 0 : i32
    return %c0_i32, %c0_i32_0 : i32, i32
  }
  func.func @transform_2(%arg0: i32, %arg1: i32) -> (i32, i32) {
    %c0_i32 = arith.constant 0 : i32
    %c0_i32_0 = arith.constant 0 : i32
    %c0_i32_1 = arith.constant 0 : i32
    return %c0_i32, %c0_i32_0 : i32, i32
  }
  func.func @transform_3(%arg0: i32, %arg1: i32) -> (i32, i32, i32) {
    %c0_i32 = arith.constant 0 : i32
    %c0_i32_0 = arith.constant 0 : i32
    return %arg0, %c0_i32, %arg1 : i32, i32, i32
  }
}

module attributes {stable_mosaic.version = 11 : i64} {
  func.func @_lna_kernel(%arg0: i32, %arg1: i32, %arg2: memref<1x8x256xf32, #tpu.memory_space<vmem>>, %arg3: memref<16x8xf32, #tpu.memory_space<vmem>>, %arg4: memref<16x1xf32, #tpu.memory_space<vmem>>, %arg5: memref<1x16x256xf32, #tpu.memory_space<vmem>>) attributes {dimension_semantics = [#tpu.dimension_semantics<parallel>, #tpu.dimension_semantics<parallel>], iteration_bounds = array<i64: 2, 1>, scalar_prefetch = 0 : i64, scratch_operands = 0 : i64, tpu.core_type = #tpu.core_type<tc>, window_params = [{transform_indices = @transform_0, window_bounds = array<i64: 1, 8, 256>}, {pipeline_mode = #tpu.pipeline_mode<synchronous>, transform_indices = @transform_1, window_bounds = array<i64: 16, 8>}, {pipeline_mode = #tpu.pipeline_mode<synchronous>, transform_indices = @transform_2, window_bounds = array<i64: 16, 1>}, {transform_indices = @transform_3, window_bounds = array<i64: 1, 16, 256>}]} {
    %c0 = arith.constant 0 : index
    %c0_0 = arith.constant 0 : index
    %0 = vector.load %arg3[%c0, %c0_0] : memref<16x8xf32, #tpu.memory_space<vmem>>, vector<16x8xf32>
    %c0_1 = arith.constant 0 : index
    %c0_2 = arith.constant 0 : index
    %c0_3 = arith.constant 0 : index
    %1 = vector.load %arg2[%c0_1, %c0_2, %c0_3] : memref<1x8x256xf32, #tpu.memory_space<vmem>>, vector<1x8x256xf32>
    %2 = vector.shape_cast %1 : vector<1x8x256xf32> to vector<8x256xf32>
    %cst = arith.constant dense<0.000000e+00> : vector<16x256xf32>
    %3 = tpu.matmul %0, %2, %cst {dimension_numbers = #tpu.dot_dimension_numbers<[1], [0], [0], [1], [0, 0, 1, 1], [], []>} : vector<16x8xf32>, vector<8x256xf32>, vector<16x256xf32> -> vector<16x256xf32>
    %c0_4 = arith.constant 0 : index
    %c0_5 = arith.constant 0 : index
    %4 = vector.load %arg4[%c0_4, %c0_5] : memref<16x1xf32, #tpu.memory_space<vmem>>, vector<16x1xf32>
    %5 = vector.broadcast %4 : vector<16x1xf32> to vector<16x256xf32>
    %6 = arith.addf %3, %5 : vector<16x256xf32>
    %cst_6 = arith.constant 0.000000e+00 : f32
    %7 = vector.broadcast %cst_6 : f32 to vector<16x256xf32>
    %8 = arith.maximumf %6, %7 : vector<16x256xf32>
    %c0_7 = arith.constant 0 : index
    %c0_8 = arith.constant 0 : index
    %c0_9 = arith.constant 0 : index
    %9 = vector.load %arg5[%c0_7, %c0_8, %c0_9] : memref<1x16x256xf32, #tpu.memory_space<vmem>>, vector<1x16x256xf32>
    %10 = vector.shape_cast %9 : vector<1x16x256xf32> to vector<16x256xf32>
    %11 = vector.shape_cast %8 : vector<16x256xf32> to vector<1x16x256xf32>
    tpu.vector_store %arg5[%c0_7, %c0_8, %c0_9], %11 {strides = array<i32>} : memref<1x16x256xf32, #tpu.memory_space<vmem>>, vector<1x16x256xf32>,
    return
  }
  func.func @transform_0(%arg0: i32, %arg1: i32) -> (i32, i32, i32) {
    %c0_i32 = arith.constant 0 : i32
    %c0_i32_0 = arith.constant 0 : i32
    return %arg0, %c0_i32, %arg1 : i32, i32, i32
  }
  func.func @transform_1(%arg0: i32, %arg1: i32) -> (i32, i32) {
    %c0_i32 = arith.constant 0 : i32
    %c0_i32_0 = arith.constant 0 : i32
    %c0_i32_1 = arith.constant 0 : i32
    return %c0_i32, %c0_i32_0 : i32, i32
  }
  func.func @transform_2(%arg0: i32, %arg1: i32) -> (i32, i32) {
    %c0_i32 = arith.constant 0 : i32
    %c0_i32_0 = arith.constant 0 : i32
    %c0_i32_1 = arith.constant 0 : i32
    return %c0_i32, %c0_i32_0 : i32, i32
  }
  func.func @transform_3(%arg0: i32, %arg1: i32) -> (i32, i32, i32) {
    %c0_i32 = arith.constant 0 : i32
    %c0_i32_0 = arith.constant 0 : i32
    return %arg0, %c0_i32, %arg1 : i32, i32, i32
  }
}

</mosaic_0001>

<bundles_post_ra>
// kernel: tpu_custom_call.1
= control target key start
LH: loop header
LB: loop body
LE: loop exit
PB: predicated region body
PF: predicated region fallthrough
CT: control target
= control target key end

     0   :  { %8 = vsyncpa [#allocation3], 0  ;;  %s666_s0 = inlined_call_operand.vmem [shape: f32[2,8,256], index: 0, kind: input, shape index: {}]   ;;  %s667_s1 = inlined_call_operand.vmem [shape: f32[16,8], index: 1, kind: input, shape index: {}]   ;;  %s668_s2 = inlined_call_operand.vmem [shape: f32[16,1], index: 2, kind: input, shape index: {}]   ;;  %s669_s3 = inlined_call_operand.hbm [shape: f32[2,16,256], index: 3, kind: output, shape index: {}]  }
   0x1   :  { %10 = vsyncpa [#allocation3 + $0x1], 0  ;;  %s557_s12 = smov 0   ;;  %s559_s13 = smov 0  }
   0x2   :  { %s561_s14 = smov 0   ;;  %s563_s15 = smov 0  }
   0x3   :  { %s565_s16 = smov 0   ;;  %s567_s17 = smov 0  }
   0x4 LB: > { %s374_s18 = sadd.s32 4294967295, %s532_s17   ;;  %s375_s19 = sadd.s32 4294967294, %s532_s17   ;;  %s532_s17 = sphi %s567_s17, %s16_s17   ;;  %s528_s16 = sphi %s565_s16, %s676_s16   ;;  %s524_s15 = sphi %s563_s15, %s675_s15   ;;  %s520_s14 = sphi %s561_s14, %s674_s14   ;;  %s516_s13 = sphi %s559_s13, %s673_s13   ;;  %s512_s12 = sphi %s557_s12, %s672_s12  }
   0x5   : > { %s28_s20 = sadd.s32 1, %s528_s16  ;;  %s107_s21 = sadd.s32 1, %s520_s14 }
   0x6   : > { %p30_p0 = scmp.ge.s32.totalorder %s28_s20, 2  ;;  %p117_p1 = scmp.ne.s32.totalorder %s520_s14, %s516_s13 }
   0x7   : > { %p118_p2 = scmp.eq.s32.totalorder %s374_s18, 1  ;;  %p123_p3 = scmp.ne.s32.totalorder %s516_s13, %s512_s12 }
   0x8   : > { %s678_s20 = smov (%p30_p0, %s28_s20), 0  ;;  %p124_p5 = scmp.eq.s32.totalorder %s375_s19, 1 }
   0x9   : > { %p597_p4 = por %p118_p2, %p117_p1  ;;  %s102_s23 = ssub.s32 %s528_s16, %s678_s20 }
   0xa   : > { %p378_p6 = scmp.ge.s32.totalorder %s532_s17, 1  ;;  %p105_p7 = scmp.eq.s32.totalorder %s102_s23, 0 }
   0xb   : > { %p604_p8 = por %p124_p5, %p123_p3  ;;  %p161_p9 = scmp.lt.s32.totalorder %s532_s17, 3 }
   0xc   : > { %s610_s25 = scalar_select %p105_p7, %s520_s14, %s107_s21  }
   0xd   : > { %p162_p10 = pnand %p378_p6, %p161_p9 }
   0xe   : > { %p190_p11 = scmp.lt.s32.totalorder (!%p162_p10), %s524_s15, 1  ;;  %s186_s18 = sand.u32 (!%p162_p10), 1, %s516_s13  }
   0xf   : > { %165 = sbr.rel (%p162_p10) target bundleno = 168 (0xa8), region = 32  ;;  %s379_s19 = sshll.u32 (!%p162_p10), %s186_s18, 5 }
  0x10   : > { %s392_s21 = sshll.u32 (!%p162_p10), %s524_s15, 5  ;;  %s474_s8 = scalar_lea.hbm (!%p162_p10), %s669_s3, 64 }
  0x11   : > { %s291_s27 = scalar_lea.hbm (!%p162_p10), %s669_s3, %s392_s21 }
  0x12   : > { %s294_s30 = sshll.u32 (!%p162_p10), %s291_s27, 4  ;;  %s295_s30 = int_to_ptr.hbm [resolvable:$true] %s294_s30 }
  0x13   : > { %s468_s4 = sshra.s32 (!%p162_p10), %s295_s30, 4  ;;  %s469_s4 = int_to_ptr.hbm [resolvable:$true] %s468_s4 }
  0x14   : > { %v204_v0 = vld [vmem:[%s668_s2] sm:$0xff]  ;;  %v534_v1 = vmov 0   ;;  %s191_s28 = scalar_select %p190_p11, %s524_s15, 1  ;;  %vm216_vm0 = vcmask 64512   ;;  %v201_v5 = vld [vmem:[%s667_s1 + $0x8] sm:$0xff] }
  0x15   : > { %453 = vset.pattern.permute.xlu0 %v534_v1  ;;  %v200_v2 = vld [vmem:[%s667_s1] sm:$0xff]  ;;  %v205_v6 = vld [vmem:[%s668_s2 + $0x8] sm:$0xff]  ;;  %s278_s15 = scalar_lea.sflag [#allocation3], %s186_s18  ;;  %p475_p1 = scmp.lt.s32.totalorder %s469_s4, %s669_s3 }
  0x16   : > { %208 = vperm.xlu0 %453, %v204_v0   ;;  %s391_s29 = sshll.u32 %s191_s28, 4  ;;  %s188_s28 = scalar_lea.vmem [#allocation2], %s379_s19 }
  0x17   : > { %s197_s5 = scalar_lea.vmem %s666_s0, %s391_s29  ;;  %s292_s29 = sshll.u32 %s188_s28, 4  ;;  %s293_s29 = int_to_ptr.vmem [resolvable:$true] %s292_s29 }
  0x18   : > { %v202_v3 = vld [vmem:[%s197_s5] sm:$0xff]  ;;  %v203_v4 = vld [vmem:[%s197_s5 + $0x8] sm:$0xff]  ;;  %s470_s5 = scalar_lea.hbm %s469_s4, 32 }
  0x19   : > { %238 = vmatpush.msra.mxu0 %v202_v3  ;;  %393 = vmatpush.msra.mxu2 %v202_v3  ;;  %p471_p12 = scmp.ne.s32.totalorder %s469_s4, %s470_s5  ;;  %p476_p2 = scmp.lt.s32.totalorder %s474_s8, %s470_s5 }
  0x1a   : > { %261 = vmatpush.msra.mxu1 %v203_v4  ;;  %394 = vmatpush.msra.mxu3 %v203_v4 }
  0x1b   : > { %382 = vmatmul.msk.f32.vlgmr.msra.gmra.mxu0 %vm216_vm0, %v200_v2  ;;  %383 = vmatmul.msk.f32.vlgmr.msra.gmra.mxu2 %vm216_vm0, %v201_v5  ;;  %p472_p13 = pnand %p471_p12, %p597_p4  ;;  %p477_p3 = por %p476_p2, %p475_p1 }
  0x1c   : > { %384 = vmatmul.msk.f32.vlgmr.msra.gmra.mxu1 %vm216_vm0, %v200_v2  ;;  %385 = vmatmul.msk.f32.vlgmr.msra.gmra.mxu3 %vm216_vm0, %v201_v5 }
  0x1d   : > { %p473_p0 = pneg %p472_p13 }
  0x1e   : > { %213 = vperm.xlu0 %453, %v205_v6  }
  0x1f   : > { %p478_p5 = pnand %p477_p3, %p473_p0 }
  0x88   : > { %v209_v7 = vpop.permute.xlu0 %208 }
  0x90   : > { %v214_v14 = vpop.permute.xlu0 %213 }
  0x98   : > { %v240_v8 = vpop.f32.mrf.mxu0 }
  0x99   : > { %v241_v9 = vadd.f32 %v240_v8, %v209_v7  ;;  %v263_v10 = vpop.f32.mrf.mxu1 }
  0x9a   : > { %v264_v11 = vadd.f32 %v263_v10, %v209_v7 }
  0x9b   : > { %v269_v12 = vmax.f32 %v241_v9, 0.0 }
  0x9c   : > { %v270_v13 = vmax.f32 %v264_v11, 0.0 }
  0x9d   : > { %273 = vst [vmem:[%s188_s28] sm:$0xff] %v269_v12 }
  0x9e   : > { %274 = vst [vmem:[%s188_s28 + $0x8] sm:$0xff] %v270_v13  ;;  %v243_v15 = vpop.f32.mrf.mxu2 }
  0x9f   : > { %v244_v16 = vadd.f32 %v243_v15, %v214_v14  ;;  %v266_v17 = vpop.f32.mrf.mxu3 }
  0xa0   : > { %v267_v18 = vadd.f32 %v266_v17, %v214_v14 }
  0xa1   : > { %v271_v19 = vmax.f32 %v244_v16, 0.0 }
  0xa2   : > { %v272_v20 = vmax.f32 %v267_v18, 0.0 }
  0xa3   : > { %275 = vst [vmem:[%s188_s28 + $0x10] sm:$0xff] %v271_v19 }
  0xa4   : > { %276 = vst [vmem:[%s188_s28 + $0x18] sm:$0xff] %v272_v20 }
  0xa5   : > { %481 = shalt.err (!%p478_p5)
}
  0xa6   : > { %s535_s11 = smov 256   ;;  %s536_s18 = smov 16  }
  0xa7   : > { %395 = dma.vmem_to_hbm [thread:$0]  (%p597_p4), %s293_s29, 512, %s295_s30, %s278_s15, %s535_s11, %s535_s11, %s536_s18  }
  0xa8 PF: > { %p401_p6 = scmp.ge.s32.totalorder %s532_s17, 2  ;;  %s309_s19 = sand.u32 1, %s512_s12  }
  0xa9   : > { %s310_s21 = scalar_lea.sflag [#allocation3], %s309_s19 }
  0xaa   : > { %p398_p7 = pnand %p401_p6, %p604_p8 }
  0xac   : > { %p399_p9 = pneg %p398_p7 }
  0xae   : > { %507 = dma.done.wait (%p399_p9), %s310_s21, 512  }
  0xaf   : > { %509 = vsyncadd (%p399_p9), %s310_s21, 4294966784  ;;  %s16_s17 = sadd.s32 1, %s532_s17   ;;  %s672_s12 = smov %s516_s13 }
  0xb0   : > { %p13_p10 = scmp.ge.s32.totalorder %s16_s17, 4   ;;  %s673_s13 = smov %s520_s14 }
  0xb1   : > { %s674_s14 = smov %s610_s25  ;;  %s675_s15 = smov %s528_s16 }
  0xb2   : > { %s676_s16 = smov %s678_s20  ;;  %15 = sbr.rel (!%p13_p10) target bundleno = 4 (0x4), region = 67 }
  0xb7   :  { %316 = vsyncpa [#allocation3], 1 }
  0xb8   :  { %318 = vsyncpa [#allocation3 + $0x1], 1 }

// kernel: tpu_custom_call.1
= control target key start
LH: loop header
LB: loop body
LE: loop exit
PB: predicated region body
PF: predicated region fallthrough
CT: control target
= control target key end

     0   :  { %8 = vsyncpa [#allocation3], 0  ;;  %s666_s0 = inlined_call_operand.vmem [shape: f32[2,8,256], index: 0, kind: input, shape index: {}]   ;;  %s667_s1 = inlined_call_operand.vmem [shape: f32[16,8], index: 1, kind: input, shape index: {}]   ;;  %s668_s2 = inlined_call_operand.vmem [shape: f32[16,1], index: 2, kind: input, shape index: {}]   ;;  %s669_s3 = inlined_call_operand.hbm [shape: f32[2,16,256], index: 3, kind: output, shape index: {}]  }
   0x1   :  { %10 = vsyncpa [#allocation3 + $0x1], 0  ;;  %s557_s12 = smov 0   ;;  %s559_s13 = smov 0  }
   0x2   :  { %s561_s14 = smov 0   ;;  %s563_s15 = smov 0  }
   0x3   :  { %s565_s16 = smov 0   ;;  %s567_s17 = smov 0  }
   0x4 LB: > { %s374_s18 = sadd.s32 4294967295, %s532_s17   ;;  %s375_s19 = sadd.s32 4294967294, %s532_s17   ;;  %s532_s17 = sphi %s567_s17, %s16_s17   ;;  %s528_s16 = sphi %s565_s16, %s676_s16   ;;  %s524_s15 = sphi %s563_s15, %s675_s15   ;;  %s520_s14 = sphi %s561_s14, %s674_s14   ;;  %s516_s13 = sphi %s559_s13, %s673_s13   ;;  %s512_s12 = sphi %s557_s12, %s672_s12  }
   0x5   : > { %s28_s20 = sadd.s32 1, %s528_s16  ;;  %s107_s21 = sadd.s32 1, %s520_s14 }
   0x6   : > { %p30_p0 = scmp.ge.s32.totalorder %s28_s20, 2  ;;  %p117_p1 = scmp.ne.s32.totalorder %s520_s14, %s516_s13 }
   0x7   : > { %p118_p2 = scmp.eq.s32.totalorder %s374_s18, 1  ;;  %p123_p3 = scmp.ne.s32.totalorder %s516_s13, %s512_s12 }
   0x8   : > { %s678_s20 = smov (%p30_p0, %s28_s20), 0  ;;  %p124_p5 = scmp.eq.s32.totalorder %s375_s19, 1 }
   0x9   : > { %p597_p4 = por %p118_p2, %p117_p1  ;;  %s102_s23 = ssub.s32 %s528_s16, %s678_s20 }
   0xa   : > { %p378_p6 = scmp.ge.s32.totalorder %s532_s17, 1  ;;  %p105_p7 = scmp.eq.s32.totalorder %s102_s23, 0 }
   0xb   : > { %p604_p8 = por %p124_p5, %p123_p3  ;;  %p161_p9 = scmp.lt.s32.totalorder %s532_s17, 3 }
   0xc   : > { %s610_s25 = scalar_select %p105_p7, %s520_s14, %s107_s21  }
   0xd   : > { %p162_p10 = pnand %p378_p6, %p161_p9 }
   0xe   : > { %p190_p11 = scmp.lt.s32.totalorder (!%p162_p10), %s524_s15, 1  ;;  %s186_s18 = sand.u32 (!%p162_p10), 1, %s516_s13  }
   0xf   : > { %165 = sbr.rel (%p162_p10) target bundleno = 168 (0xa8), region = 32  ;;  %s379_s19 = sshll.u32 (!%p162_p10), %s186_s18, 5 }
  0x10   : > { %s392_s21 = sshll.u32 (!%p162_p10), %s524_s15, 5  ;;  %s474_s8 = scalar_lea.hbm (!%p162_p10), %s669_s3, 64 }
  0x11   : > { %s291_s27 = scalar_lea.hbm (!%p162_p10), %s669_s3, %s392_s21 }
  0x12   : > { %s294_s30 = sshll.u32 (!%p162_p10), %s291_s27, 4  ;;  %s295_s30 = int_to_ptr.hbm [resolvable:$true] %s294_s30 }
  0x13   : > { %s468_s4 = sshra.s32 (!%p162_p10), %s295_s30, 4  ;;  %s469_s4 = int_to_ptr.hbm [resolvable:$true] %s468_s4 }
  0x14   : > { %v204_v0 = vld [vmem:[%s668_s2] sm:$0xff]  ;;  %v534_v1 = vmov 0   ;;  %s191_s28 = scalar_select %p190_p11, %s524_s15, 1  ;;  %vm216_vm0 = vcmask 64512   ;;  %v201_v5 = vld [vmem:[%s667_s1 + $0x8] sm:$0xff] }
  0x15   : > { %453 = vset.pattern.permute.xlu0 %v534_v1  ;;  %v200_v2 = vld [vmem:[%s667_s1] sm:$0xff]  ;;  %v205_v6 = vld [vmem:[%s668_s2 + $0x8] sm:$0xff]  ;;  %s278_s15 = scalar_lea.sflag [#allocation3], %s186_s18  ;;  %p475_p1 = scmp.lt.s32.totalorder %s469_s4, %s669_s3 }
  0x16   : > { %208 = vperm.xlu0 %453, %v204_v0   ;;  %s391_s29 = sshll.u32 %s191_s28, 4  ;;  %s188_s28 = scalar_lea.vmem [#allocation2], %s379_s19 }
  0x17   : > { %s197_s5 = scalar_lea.vmem %s666_s0, %s391_s29  ;;  %s292_s29 = sshll.u32 %s188_s28, 4  ;;  %s293_s29 = int_to_ptr.vmem [resolvable:$true] %s292_s29 }
  0x18   : > { %v202_v3 = vld [vmem:[%s197_s5] sm:$0xff]  ;;  %v203_v4 = vld [vmem:[%s197_s5 + $0x8] sm:$0xff]  ;;  %s470_s5 = scalar_lea.hbm %s469_s4, 32 }
  0x19   : > { %238 = vmatpush.msra.mxu0 %v202_v3  ;;  %393 = vmatpush.msra.mxu2 %v202_v3  ;;  %p471_p12 = scmp.ne.s32.totalorder %s469_s4, %s470_s5  ;;  %p476_p2 = scmp.lt.s32.totalorder %s474_s8, %s470_s5 }
  0x1a   : > { %261 = vmatpush.msra.mxu1 %v203_v4  ;;  %394 = vmatpush.msra.mxu3 %v203_v4 }
  0x1b   : > { %382 = vmatmul.msk.f32.vlgmr.msra.gmra.mxu0 %vm216_vm0, %v200_v2  ;;  %383 = vmatmul.msk.f32.vlgmr.msra.gmra.mxu2 %vm216_vm0, %v201_v5  ;;  %p472_p13 = pnand %p471_p12, %p597_p4  ;;  %p477_p3 = por %p476_p2, %p475_p1 }
  0x1c   : > { %384 = vmatmul.msk.f32.vlgmr.msra.gmra.mxu1 %vm216_vm0, %v200_v2  ;;  %385 = vmatmul.msk.f32.vlgmr.msra.gmra.mxu3 %vm216_vm0, %v201_v5 }
  0x1d   : > { %p473_p0 = pneg %p472_p13 }
  0x1e   : > { %213 = vperm.xlu0 %453, %v205_v6  }
  0x1f   : > { %p478_p5 = pnand %p477_p3, %p473_p0 }
  0x88   : > { %v209_v7 = vpop.permute.xlu0 %208 }
  0x90   : > { %v214_v14 = vpop.permute.xlu0 %213 }
  0x98   : > { %v240_v8 = vpop.f32.mrf.mxu0 }
  0x99   : > { %v241_v9 = vadd.f32 %v240_v8, %v209_v7  ;;  %v263_v10 = vpop.f32.mrf.mxu1 }
  0x9a   : > { %v264_v11 = vadd.f32 %v263_v10, %v209_v7 }
  0x9b   : > { %v269_v12 = vmax.f32 %v241_v9, 0.0 }
  0x9c   : > { %v270_v13 = vmax.f32 %v264_v11, 0.0 }
  0x9d   : > { %273 = vst [vmem:[%s188_s28] sm:$0xff] %v269_v12 }
  0x9e   : > { %274 = vst [vmem:[%s188_s28 + $0x8] sm:$0xff] %v270_v13  ;;  %v243_v15 = vpop.f32.mrf.mxu2 }
  0x9f   : > { %v244_v16 = vadd.f32 %v243_v15, %v214_v14  ;;  %v266_v17 = vpop.f32.mrf.mxu3 }
  0xa0   : > { %v267_v18 = vadd.f32 %v266_v17, %v214_v14 }
  0xa1   : > { %v271_v19 = vmax.f32 %v244_v16, 0.0 }
  0xa2   : > { %v272_v20 = vmax.f32 %v267_v18, 0.0 }
  0xa3   : > { %275 = vst [vmem:[%s188_s28 + $0x10] sm:$0xff] %v271_v19 }
  0xa4   : > { %276 = vst [vmem:[%s188_s28 + $0x18] sm:$0xff] %v272_v20 }
  0xa5   : > { %481 = shalt.err (!%p478_p5)
}
  0xa6   : > { %s535_s11 = smov 256   ;;  %s536_s18 = smov 16  }
  0xa7   : > { %395 = dma.vmem_to_hbm [thread:$0]  (%p597_p4), %s293_s29, 512, %s295_s30, %s278_s15, %s535_s11, %s535_s11, %s536_s18  }
  0xa8 PF: > { %p401_p6 = scmp.ge.s32.totalorder %s532_s17, 2  ;;  %s309_s19 = sand.u32 1, %s512_s12  }
  0xa9   : > { %s310_s21 = scalar_lea.sflag [#allocation3], %s309_s19 }
  0xaa   : > { %p398_p7 = pnand %p401_p6, %p604_p8 }
  0xac   : > { %p399_p9 = pneg %p398_p7 }
  0xae   : > { %507 = dma.done.wait (%p399_p9), %s310_s21, 512  }
  0xaf   : > { %509 = vsyncadd (%p399_p9), %s310_s21, 4294966784  ;;  %s16_s17 = sadd.s32 1, %s532_s17   ;;  %s672_s12 = smov %s516_s13 }
  0xb0   : > { %p13_p10 = scmp.ge.s32.totalorder %s16_s17, 4   ;;  %s673_s13 = smov %s520_s14 }
  0xb1   : > { %s674_s14 = smov %s610_s25  ;;  %s675_s15 = smov %s528_s16 }
  0xb2   : > { %s676_s16 = smov %s678_s20  ;;  %15 = sbr.rel (!%p13_p10) target bundleno = 4 (0x4), region = 67 }
  0xb7   :  { %316 = vsyncpa [#allocation3], 1 }
  0xb8   :  { %318 = vsyncpa [#allocation3 + $0x1], 1 }

</bundles_post_ra>
